<compile_context>
chip_gen: v6e
topology: v6e:2x2x1
jax: 0.10.0
libtpu: 0.0.40
codegen_flags: <defaults>
</compile_context>

<pallas_src>
import jax
import jax.numpy as jnp
from jax.experimental import pallas as pl
from jax.experimental.pallas import tpu as pltpu


def _scale_kernel(scale_ref, x_ref, o_ref):
    # scale_ref: SMEM (1,) scalar parameter
    # x_ref / o_ref: VMEM tile of the lane-dense flattened input
    o_ref[...] = (x_ref[...] * scale_ref[0]).astype(o_ref.dtype)


def _cdiv(a, b):
    return -(-a // b)


def scale_layer(x, scale, *, target_block_bytes=8 << 20, vmem_limit_bytes=48 << 20):
    """out = x * scale, computed in a Pallas kernel.

    x: arbitrary-shape float array (e.g. NCHW activations)
    scale: (1,) float32 learnable parameter
    """
    orig_shape = x.shape
    total = int(x.size)  # static Python int
    if total == 0:
        # Empty tensor: elementwise multiply is a no-op.
        return x

    itemsize = jnp.dtype(x.dtype).itemsize
    # Minimum sublane multiple: f32 -> 8, bf16 -> 16, int8/fp8 -> 32.
    sub = 8 * (4 // itemsize)

    # Lane width: largest multiple of 128 (<= 512) dividing total -> exact reshape,
    # no pad / slice copies for the common case.
    L = None
    for cand in (512, 256, 128):
        if total % cand == 0:
            L = cand
            break

    padded_total = total
    if L is None:
        # Rare fallback: x.size not a multiple of 128. Pad (one extra read+write).
        L = 128
        padded_total = _cdiv(total, L) * L

    rows = padded_total // L

    if rows <= sub:
        # Tiny input: single block whose row dim equals the full array dim (allowed
        # even when it is not a sublane multiple).
        row_tile = rows
    else:
        # ~target_block_bytes per block, rounded down to the sublane quantum and
        # capped at the largest sublane multiple <= rows.
        row_tile = max(sub, (target_block_bytes // (L * itemsize)) // sub * sub)
        row_tile = min(row_tile, (rows // sub) * sub)
        # v7x megacore: keep >= 2 grid steps when possible so both TensorCores
        # (and both halves of the per-chip HBM bandwidth) get work.
        while _cdiv(rows, row_tile) < 2 and row_tile > sub:
            row_tile = max(sub, (row_tile // 2) // sub * sub)

    grid = (_cdiv(rows, row_tile),)

    flat = x.reshape(-1)
    if padded_total != total:
        flat = jnp.pad(flat, (0, padded_total - total))
    x2d = flat.reshape(rows, L)

    out2d = pl.pallas_call(
        _scale_kernel,
        out_shape=jax.ShapeDtypeStruct((rows, L), x.dtype),
        grid_spec=pltpu.PrefetchScalarGridSpec(
            num_scalar_prefetch=0,
            grid=grid,
            in_specs=[
                pl.BlockSpec(memory_space=pltpu.SMEM),             # scale scalar (resident)
                pl.BlockSpec((row_tile, L), lambda i: (i, 0)),     # input tile
            ],
            out_specs=pl.BlockSpec((row_tile, L), lambda i: (i, 0)),
        ),
        compiler_params=pltpu.CompilerParams(
            dimension_semantics=("parallel",),
            vmem_limit_bytes=vmem_limit_bytes,  # covers 2x(in)+2x(out) 8 MiB blocks, <= v7x's 64 MiB
        ),
    )(scale, x2d)

    out_flat = out2d.reshape(-1)
    if padded_total != total:
        out_flat = out_flat[:total]
    return out_flat.reshape(orig_shape)


if __name__ == "__main__":
    key = jax.random.PRNGKey(0)

    # Deterministic parameter init, matching nn.Parameter(torch.FloatTensor([0.25]))
    init_value = 0.25
    scale = jnp.array([init_value], dtype=jnp.float32)

    # Small NCHW example input
    x = jax.random.normal(key, (2, 4, 16, 16), dtype=jnp.float32)

    out = scale_layer(x, scale)
    out = jax.block_until_ready(out)

    # Correctness check against plain JAX reference
    ref = x * scale[0]
    assert out.shape == x.shape
    assert jnp.allclose(out, ref, atol=1e-6, rtol=1e-6)

    print("KERNEL_OK")
</pallas_src>

<mosaic_0001>
module attributes {stable_mosaic.version = 11 : i64} {
  func.func @_scale_kernel(%arg0: i32, %arg1: memref<1xf32, #tpu.memory_space<smem>>, %arg2: memref<4x512xf32, #tpu.memory_space<vmem>>, %arg3: memref<4x512xf32, #tpu.memory_space<vmem>>) attributes {dimension_semantics = [#tpu.dimension_semantics<parallel>], iteration_bounds = array<i64: 1>, scalar_prefetch = 0 : i64, scratch_operands = 0 : i64, tpu.core_type = #tpu.core_type<tc>, window_params = [{transform_indices = @transform_0, window_bounds = array<i64: 1>}, {transform_indices = @transform_1, window_bounds = array<i64: 4, 512>}, {transform_indices = @transform_2, window_bounds = array<i64: 4, 512>}]} {
    %c0 = arith.constant 0 : index
    %c0_0 = arith.constant 0 : index
    %0 = vector.load %arg2[%c0, %c0_0] : memref<4x512xf32, #tpu.memory_space<vmem>>, vector<4x512xf32>
    %c0_1 = arith.constant 0 : index
    %1 = memref.load %arg1[%c0_1] : memref<1xf32, #tpu.memory_space<smem>>
    %2 = vector.broadcast %1 : f32 to vector<4x512xf32>
    %3 = arith.mulf %0, %2 : vector<4x512xf32>
    %c0_2 = arith.constant 0 : index
    %c0_3 = arith.constant 0 : index
    %4 = vector.load %arg3[%c0_2, %c0_3] : memref<4x512xf32, #tpu.memory_space<vmem>>, vector<4x512xf32>
    tpu.vector_store %arg3[%c0_2, %c0_3], %3 {strides = array<i32>} : memref<4x512xf32, #tpu.memory_space<vmem>>, vector<4x512xf32>,
    return
  }
  func.func @transform_0(%arg0: i32) -> i32 {
    %c0_i32 = arith.constant 0 : i32
    %c0_i32_0 = arith.constant 0 : i32
    return %c0_i32 : i32
  }
  func.func @transform_1(%arg0: i32) -> (i32, i32) {
    %c0_i32 = arith.constant 0 : i32
    %c0_i32_0 = arith.constant 0 : i32
    return %arg0, %c0_i32 : i32, i32
  }
  func.func @transform_2(%arg0: i32) -> (i32, i32) {
    %c0_i32 = arith.constant 0 : i32
    %c0_i32_0 = arith.constant 0 : i32
    return %arg0, %c0_i32 : i32, i32
  }
}

</mosaic_0001>

<bundles_post_ra>
// kernel: tpu_custom_call.1
= control target key start
LH: loop header
LB: loop body
LE: loop exit
PB: predicated region body
PF: predicated region fallthrough
CT: control target
= control target key end

     0   :  { %8 = vsyncpa [#allocation4], 0  ;;  %s120_s0 = inlined_call_operand.<no memory space> [shape: f32[1], index: 0, kind: input, shape index: {}]   ;;  %s121_s1 = inlined_call_operand.hbm [shape: f32[4,512], index: 1, kind: input, shape index: {}]   ;;  %s122_s2 = inlined_call_operand.hbm [shape: f32[4,512], index: 2, kind: output, shape index: {}]  }
   0x1   :  { %9 = vsyncpa [#allocation5], 0  ;;  %s94_s9 = smov [#allocation3]  }
   0x2   :  { %s18_s10 = sshll.u32 %s94_s9, 4  ;;  %s19_s10 = int_to_ptr.vmem [resolvable:$true] %s18_s10 }
   0x3   :  { %s58_s11 = scalar_lea.vmem %s19_s10, 256  ;;  %p63_p1 = scmp.lt.s32.totalorder %s19_s10, %s19_s10 }
   0x4   :  { %p59_p0 = scmp.ne.s32.totalorder %s19_s10, %s58_s11  ;;  %p64_p2 = scmp.lt.s32.totalorder %s58_s11, %s58_s11 }
   0x6   :  { %p65_p3 = por %p64_p2, %p63_p1 }
   0x8   :  { %p66_p4 = pnand %p65_p3, %p59_p0 }
   0xa   :  { %69 = shalt.err (!%p66_p4)
}
   0xb   :  { %21 = dma.hbm_to_vmem [thread:$0]  %s121_s1, 256, %s19_s10, [#allocation4]  }
   0xc   :  { %90 = dma.done.wait [#allocation4], 256  }
   0xd   :  { %91 = vsyncadd [#allocation4], 4294967040  ;;  %v28_v0 = vstv %s120_s0  ;;  %s95_s16 = smov [#allocation6]   ;;  %v25_v1 = vld [vmem:[#allocation3] sm:$0xff]  ;;  %v26_v2 = vld [vmem:[#allocation3 + $0x8] sm:$0xff] }
   0xe   :  { %s39_s17 = sshll.u32 %s95_s16, 4  ;;  %v29_v3 = vmul.f32 %v28_v0, %v25_v1  ;;  %v30_v4 = vmul.f32 %v28_v0, %v26_v2  ;;  %s40_s17 = int_to_ptr.vmem [resolvable:$true] %s39_s17 }
   0xf   :  { %s70_s18 = scalar_lea.vmem %s40_s17, 256  ;;  %p75_p6 = scmp.lt.s32.totalorder %s40_s17, %s40_s17 }
  0x10   :  { %31 = vst [vmem:[#allocation6] sm:$0xff] %v29_v3  ;;  %32 = vst [vmem:[#allocation6 + $0x8] sm:$0xff] %v30_v4  ;;  %p71_p5 = scmp.ne.s32.totalorder %s40_s17, %s70_s18  ;;  %p76_p7 = scmp.lt.s32.totalorder %s70_s18, %s70_s18 }
  0x12   :  { %p77_p8 = por %p76_p7, %p75_p6 }
  0x14   :  { %p78_p9 = pnand %p77_p8, %p71_p5 }
  0x16   :  { %81 = shalt.err (!%p78_p9)
}
  0x17   :  { %42 = dma.vmem_to_hbm [thread:$0]  %s40_s17, 256, %s122_s2, [#allocation5]  }
  0x18   :  { %92 = dma.done.wait [#allocation5], 256  }
  0x19   :  { %93 = vsyncadd [#allocation5], 4294967040 }
  0x1a   :  { %46 = vsyncpa [#allocation4], 1 }
  0x1b   :  { %47 = vsyncpa [#allocation5], 1 }

</bundles_post_ra>
